<compile_context>
chip_gen: v7x
topology: tpu7x:2x2x1
jax: 0.10.0
libtpu: 0.0.40
codegen_flags: <defaults>
</compile_context>

<pallas_src>
import jax
import jax.numpy as jnp
from jax.experimental import pallas as pl
from jax.experimental.pallas import tpu as pltpu

LANE = 128


def _round_up(n, m):
    return ((n + m - 1) // m) * m


def vae_kernel(x_ref, w1_ref, b1_ref, wmv_ref, bmv_ref,
               wd2_ref, bd2_ref, wd1_ref, bd1_ref,
               mv_ref, recon_ref):
    """One batch tile of the fused VAE forward.

    h = relu(x W1 + b1)
    [mean | logvar] = h Wmv + bmv          (fused heads)
    d = relu(mean Wd2 + bd2)
    recon = sigmoid(d Wd1 + bd1)
    """
    x = x_ref[...]                                                  # bf16 [TB, D0p]

    # --- encoder layer 0 ('First'): Linear + ReLU ---
    h = jnp.dot(x, w1_ref[...], preferred_element_type=jnp.float32) + b1_ref[...]
    h = jnp.maximum(h, 0.0)

    # --- fused mean|logvar heads ('Last' encoder + var_layer encoder) ---
    mv = jnp.dot(h.astype(jnp.bfloat16), wmv_ref[...],
                 preferred_element_type=jnp.float32) + bmv_ref[...]
    mv_ref[...] = mv                                                # [TB, 2*D2p]

    # --- decoder stack (get_recon), fed with x_mean ---
    # TODO(synk): no reparameterization/sampling is defined in the PyTorch
    # module (forward() is `pass`), so the decoder consumes x_mean directly.
    d2p = wd2_ref.shape[0]                                          # static
    x_mean = mv[:, :d2p]
    d = jnp.dot(x_mean.astype(jnp.bfloat16), wd2_ref[...],
                preferred_element_type=jnp.float32) + bd2_ref[...]
    d = jnp.maximum(d, 0.0)
    logits = jnp.dot(d.astype(jnp.bfloat16), wd1_ref[...],
                     preferred_element_type=jnp.float32) + bd1_ref[...]
    # sigmoid kept on the EUP path: exp + approximate reciprocal.
    recon_ref[...] = pl.reciprocal(1.0 + jnp.exp(-logits), approx=True)


def vae_forward(x, params, *, tb=None):
    """x: [B, D0] float32.  params: dict of [in, out] f32 weights / [1, out] biases."""
    B, D0 = x.shape
    D1 = params["w1"].shape[1]
    D2 = params["wm"].shape[1]

    D0p = _round_up(D0, LANE)
    D1p = _round_up(D1, LANE)
    D2p = _round_up(D2, LANE)

    # Batch tile: multiple of 16 (bf16 sublane packing), capped at 512.
    # (For very large feature dims, re-derive against the scoped VMEM budget —
    #  v7x has half the VMEM of v5e/v6e — and set vmem_limit_bytes.)
    if tb is None:
        tb = min(512, _round_up(B, 16))
    Bp = _round_up(B, tb)

    def pad2(a, r, c):
        return jnp.pad(a, ((0, r - a.shape[0]), (0, c - a.shape[1])))

    # Zero padding => padded lanes stay exactly 0 through relu / matmuls.
    xp = pad2(x, Bp, D0p).astype(jnp.bfloat16)
    w1 = pad2(params["w1"], D0p, D1p).astype(jnp.bfloat16)
    b1 = pad2(params["b1"], 1, D1p)
    wmv = jnp.concatenate([pad2(params["wm"], D1p, D2p),
                           pad2(params["wv"], D1p, D2p)], axis=1).astype(jnp.bfloat16)
    bmv = jnp.concatenate([pad2(params["bm"], 1, D2p),
                           pad2(params["bv"], 1, D2p)], axis=1)
    wd2 = pad2(params["wd2"], D2p, D1p).astype(jnp.bfloat16)
    bd2 = pad2(params["bd2"], 1, D1p)
    wd1 = pad2(params["wd1"], D1p, D0p).astype(jnp.bfloat16)
    bd1 = pad2(params["bd1"], 1, D0p)

    grid = (Bp // tb,)

    def tile_spec(shape):      # activation/output: new block per grid step
        return pl.BlockSpec(shape, lambda i: (i, 0))

    def resident_spec(shape):  # weights/biases: same block -> VMEM-resident
        return pl.BlockSpec(shape, lambda i: (0, 0))

    flops = 2 * Bp * (D0p * D1p + D1p * (2 * D2p) + D2p * D1p + D1p * D0p)
    bytes_accessed = (
        Bp * D0p * 2                                            # x (bf16)
        + (D0p * D1p + D1p * 2 * D2p + D2p * D1p + D1p * D0p) * 2   # weights (bf16)
        + (D1p + 2 * D2p + D1p + D0p) * 4                       # biases (f32)
        + Bp * (2 * D2p + D0p) * 4                              # outputs (f32)
    )
    cost = pl.CostEstimate(flops=flops,
                           transcendentals=Bp * D0p,
                           bytes_accessed=bytes_accessed)

    mv, recon = pl.pallas_call(
        vae_kernel,
        out_shape=(
            jax.ShapeDtypeStruct((Bp, 2 * D2p), jnp.float32),   # [mean | logvar]
            jax.ShapeDtypeStruct((Bp, D0p), jnp.float32),       # recon (pre-slice)
        ),
        grid=grid,
        in_specs=[
            tile_spec((tb, D0p)),                               # x
            resident_spec((D0p, D1p)), resident_spec((1, D1p)),     # w1, b1
            resident_spec((D1p, 2 * D2p)), resident_spec((1, 2 * D2p)),  # wmv, bmv
            resident_spec((D2p, D1p)), resident_spec((1, D1p)),     # wd2, bd2
            resident_spec((D1p, D0p)), resident_spec((1, D0p)),     # wd1, bd1
        ],
        out_specs=(
            tile_spec((tb, 2 * D2p)),
            tile_spec((tb, D0p)),
        ),
        compiler_params=pltpu.CompilerParams(
            dimension_semantics=("parallel",),
        ),
        cost_estimate=cost,
    )(xp, w1, b1, wmv, bmv, wd2, bd2, wd1, bd1)

    x_mean = mv[:B, :D2]
    x_logvar = mv[:B, D2p:D2p + D2]
    recon = recon[:B, :D0]
    return x_mean, x_logvar, recon


def init_params(key, layer_sizes):
    """torch.nn.Linear-style init (U(-1/sqrt(fan_in), +1/sqrt(fan_in))).
    Weights stored as [in, out] (transposed vs torch's [out, in])."""
    D0, D1, D2 = layer_sizes

    def linear(k, fan_in, fan_out):
        kw, kb = jax.random.split(k)
        bound = 1.0 / jnp.sqrt(float(fan_in))
        w = jax.random.uniform(kw, (fan_in, fan_out), jnp.float32, -bound, bound)
        b = jax.random.uniform(kb, (1, fan_out), jnp.float32, -bound, bound)
        return w, b

    k = jax.random.split(key, 5)
    w1, b1 = linear(k[0], D0, D1)    # model_set[0] encoder
    wm, bm = linear(k[1], D1, D2)    # model_set[1] encoder (mean)
    wv, bv = linear(k[2], D1, D2)    # var_layer encoder (logvar)
    wd2, bd2 = linear(k[3], D2, D1)  # model_set[1] decoder
    wd1, bd1 = linear(k[4], D1, D0)  # model_set[0] decoder
    return dict(w1=w1, b1=b1, wm=wm, bm=bm, wv=wv, bv=bv,
                wd2=wd2, bd2=bd2, wd1=wd1, bd1=bd1)


def vae_reference(x, p):
    """Pure-JAX reference mirroring the PyTorch chain with the same bf16
    matmul operands / f32 accumulation as the kernel."""
    def dot_bf16(a, w):
        return jnp.dot(a.astype(jnp.bfloat16), w.astype(jnp.bfloat16),
                       preferred_element_type=jnp.float32)
    h = jnp.maximum(dot_bf16(x, p["w1"]) + p["b1"], 0.0)
    x_mean = dot_bf16(h, p["wm"]) + p["bm"]
    x_logvar = dot_bf16(h, p["wv"]) + p["bv"]
    d = jnp.maximum(dot_bf16(x_mean, p["wd2"]) + p["bd2"], 0.0)
    recon = jax.nn.sigmoid(dot_bf16(d, p["wd1"]) + p["bd1"])
    return x_mean, x_logvar, recon


if __name__ == "__main__":
    layer_sizes = (32, 16, 8)   # [n_vis, n_hid, n_latent]
    batch = 8

    key = jax.random.PRNGKey(0)
    kx, kp = jax.random.split(key)
    x = jax.random.normal(kx, (batch, layer_sizes[0]), dtype=jnp.float32)
    params = init_params(kp, layer_sizes)

    x_mean, x_logvar, recon = jax.block_until_ready(vae_forward(x, params))

    rm, rv, rr = vae_reference(x, params)
    assert x_mean.shape == (batch, layer_sizes[2])
    assert x_logvar.shape == (batch, layer_sizes[2])
    assert recon.shape == (batch, layer_sizes[0])
    assert jnp.allclose(x_mean, rm, atol=2e-2, rtol=2e-2)
    assert jnp.allclose(x_logvar, rv, atol=2e-2, rtol=2e-2)
    assert jnp.allclose(recon, rr, atol=2e-2, rtol=2e-2)

    print("KERNEL_OK")
</pallas_src>

<mosaic_0001>
module attributes {stable_mosaic.version = 11 : i64} {
  func.func @vae_kernel(%arg0: i32, %arg1: memref<16x128xbf16, #tpu.memory_space<vmem>>, %arg2: memref<128x128xbf16, #tpu.memory_space<vmem>>, %arg3: memref<1x128xf32, #tpu.memory_space<vmem>>, %arg4: memref<128x256xbf16, #tpu.memory_space<vmem>>, %arg5: memref<1x256xf32, #tpu.memory_space<vmem>>, %arg6: memref<128x128xbf16, #tpu.memory_space<vmem>>, %arg7: memref<1x128xf32, #tpu.memory_space<vmem>>, %arg8: memref<128x128xbf16, #tpu.memory_space<vmem>>, %arg9: memref<1x128xf32, #tpu.memory_space<vmem>>, %arg10: memref<16x256xf32, #tpu.memory_space<vmem>>, %arg11: memref<16x128xf32, #tpu.memory_space<vmem>>) attributes {dimension_semantics = [#tpu.dimension_semantics<parallel>], iteration_bounds = array<i64: 1>, scalar_prefetch = 0 : i64, scratch_operands = 0 : i64, tpu.core_type = #tpu.core_type<tc>, window_params = [{transform_indices = @transform_0, window_bounds = array<i64: 16, 128>}, {pipeline_mode = #tpu.pipeline_mode<synchronous>, transform_indices = @transform_1, window_bounds = array<i64: 128, 128>}, {pipeline_mode = #tpu.pipeline_mode<synchronous>, transform_indices = @transform_2, window_bounds = array<i64: 1, 128>}, {pipeline_mode = #tpu.pipeline_mode<synchronous>, transform_indices = @transform_3, window_bounds = array<i64: 128, 256>}, {pipeline_mode = #tpu.pipeline_mode<synchronous>, transform_indices = @transform_4, window_bounds = array<i64: 1, 256>}, {pipeline_mode = #tpu.pipeline_mode<synchronous>, transform_indices = @transform_5, window_bounds = array<i64: 128, 128>}, {pipeline_mode = #tpu.pipeline_mode<synchronous>, transform_indices = @transform_6, window_bounds = array<i64: 1, 128>}, {pipeline_mode = #tpu.pipeline_mode<synchronous>, transform_indices = @transform_7, window_bounds = array<i64: 128, 128>}, {pipeline_mode = #tpu.pipeline_mode<synchronous>, transform_indices = @transform_8, window_bounds = array<i64: 1, 128>}, {transform_indices = @transform_9, window_bounds = array<i64: 16, 256>}, {transform_indices = @transform_10, window_bounds = array<i64: 16, 128>}]} {
    %c0 = arith.constant 0 : index
    %c0_0 = arith.constant 0 : index
    %0 = vector.load %arg1[%c0, %c0_0] : memref<16x128xbf16, #tpu.memory_space<vmem>>, vector<16x128xbf16>
    %c0_1 = arith.constant 0 : index
    %c0_2 = arith.constant 0 : index
    %1 = vector.load %arg2[%c0_1, %c0_2] : memref<128x128xbf16, #tpu.memory_space<vmem>>, vector<128x128xbf16>
    %cst = arith.constant dense<0.000000e+00> : vector<16x128xf32>
    %2 = tpu.matmul %0, %1, %cst {dimension_numbers = #tpu.dot_dimension_numbers<[1], [0], [0], [1], [0, 0, 1, 1], [], []>} : vector<16x128xbf16>, vector<128x128xbf16>, vector<16x128xf32> -> vector<16x128xf32>
    %c0_3 = arith.constant 0 : index
    %c0_4 = arith.constant 0 : index
    %3 = vector.load %arg3[%c0_3, %c0_4] : memref<1x128xf32, #tpu.memory_space<vmem>>, vector<1x128xf32>
    %4 = vector.broadcast %3 : vector<1x128xf32> to vector<16x128xf32>
    %5 = arith.addf %2, %4 : vector<16x128xf32>
    %cst_5 = arith.constant 0.000000e+00 : f32
    %6 = vector.broadcast %cst_5 : f32 to vector<16x128xf32>
    %7 = arith.maximumf %5, %6 : vector<16x128xf32>
    %8 = arith.truncf %7 : vector<16x128xf32> to vector<16x128xbf16>
    %c0_6 = arith.constant 0 : index
    %c0_7 = arith.constant 0 : index
    %9 = vector.load %arg4[%c0_6, %c0_7] : memref<128x256xbf16, #tpu.memory_space<vmem>>, vector<128x256xbf16>
    %cst_8 = arith.constant dense<0.000000e+00> : vector<16x256xf32>
    %10 = tpu.matmul %8, %9, %cst_8 {dimension_numbers = #tpu.dot_dimension_numbers<[1], [0], [0], [1], [0, 0, 1, 1], [], []>} : vector<16x128xbf16>, vector<128x256xbf16>, vector<16x256xf32> -> vector<16x256xf32>
    %c0_9 = arith.constant 0 : index
    %c0_10 = arith.constant 0 : index
    %11 = vector.load %arg5[%c0_9, %c0_10] : memref<1x256xf32, #tpu.memory_space<vmem>>, vector<1x256xf32>
    %12 = vector.broadcast %11 : vector<1x256xf32> to vector<16x256xf32>
    %13 = arith.addf %10, %12 : vector<16x256xf32>
    %c0_11 = arith.constant 0 : index
    %c0_12 = arith.constant 0 : index
    %14 = vector.load %arg10[%c0_11, %c0_12] : memref<16x256xf32, #tpu.memory_space<vmem>>, vector<16x256xf32>
    tpu.vector_store %arg10[%c0_11, %c0_12], %13 {strides = array<i32>} : memref<16x256xf32, #tpu.memory_space<vmem>>, vector<16x256xf32>,
    %15 = vector.extract_strided_slice %13 {offsets = [0, 0], sizes = [16, 128], strides = [1, 1]} : vector<16x256xf32> to vector<16x128xf32>
    %16 = arith.truncf %15 : vector<16x128xf32> to vector<16x128xbf16>
    %c0_13 = arith.constant 0 : index
    %c0_14 = arith.constant 0 : index
    %17 = vector.load %arg6[%c0_13, %c0_14] : memref<128x128xbf16, #tpu.memory_space<vmem>>, vector<128x128xbf16>
    %cst_15 = arith.constant dense<0.000000e+00> : vector<16x128xf32>
    %18 = tpu.matmul %16, %17, %cst_15 {dimension_numbers = #tpu.dot_dimension_numbers<[1], [0], [0], [1], [0, 0, 1, 1], [], []>} : vector<16x128xbf16>, vector<128x128xbf16>, vector<16x128xf32> -> vector<16x128xf32>
    %c0_16 = arith.constant 0 : index
    %c0_17 = arith.constant 0 : index
    %19 = vector.load %arg7[%c0_16, %c0_17] : memref<1x128xf32, #tpu.memory_space<vmem>>, vector<1x128xf32>
    %20 = vector.broadcast %19 : vector<1x128xf32> to vector<16x128xf32>
    %21 = arith.addf %18, %20 : vector<16x128xf32>
    %cst_18 = arith.constant 0.000000e+00 : f32
    %22 = vector.broadcast %cst_18 : f32 to vector<16x128xf32>
    %23 = arith.maximumf %21, %22 : vector<16x128xf32>
    %24 = arith.truncf %23 : vector<16x128xf32> to vector<16x128xbf16>
    %c0_19 = arith.constant 0 : index
    %c0_20 = arith.constant 0 : index
    %25 = vector.load %arg8[%c0_19, %c0_20] : memref<128x128xbf16, #tpu.memory_space<vmem>>, vector<128x128xbf16>
    %cst_21 = arith.constant dense<0.000000e+00> : vector<16x128xf32>
    %26 = tpu.matmul %24, %25, %cst_21 {dimension_numbers = #tpu.dot_dimension_numbers<[1], [0], [0], [1], [0, 0, 1, 1], [], []>} : vector<16x128xbf16>, vector<128x128xbf16>, vector<16x128xf32> -> vector<16x128xf32>
    %c0_22 = arith.constant 0 : index
    %c0_23 = arith.constant 0 : index
    %27 = vector.load %arg9[%c0_22, %c0_23] : memref<1x128xf32, #tpu.memory_space<vmem>>, vector<1x128xf32>
    %28 = vector.broadcast %27 : vector<1x128xf32> to vector<16x128xf32>
    %29 = arith.addf %26, %28 : vector<16x128xf32>
    %cst_24 = arith.constant 0.000000e+00 : f32
    %30 = vector.broadcast %cst_24 : f32 to vector<16x128xf32>
    %31 = arith.subf %30, %29 : vector<16x128xf32>
    %32 = math.exp %31 : vector<16x128xf32>
    %cst_25 = arith.constant 1.000000e+00 : f32
    %33 = vector.broadcast %cst_25 : f32 to vector<16x128xf32>
    %34 = arith.addf %33, %32 : vector<16x128xf32>
    %35 = tpu.reciprocal %34 {approx = true} : vector<16x128xf32> -> vector<16x128xf32>
    %c0_26 = arith.constant 0 : index
    %c0_27 = arith.constant 0 : index
    %36 = vector.load %arg11[%c0_26, %c0_27] : memref<16x128xf32, #tpu.memory_space<vmem>>, vector<16x128xf32>
    tpu.vector_store %arg11[%c0_26, %c0_27], %35 {strides = array<i32>} : memref<16x128xf32, #tpu.memory_space<vmem>>, vector<16x128xf32>,
    return
  }
  func.func @transform_0(%arg0: i32) -> (i32, i32) {
    %c0_i32 = arith.constant 0 : i32
    %c0_i32_0 = arith.constant 0 : i32
    return %arg0, %c0_i32 : i32, i32
  }
  func.func @transform_1(%arg0: i32) -> (i32, i32) {
    %c0_i32 = arith.constant 0 : i32
    %c0_i32_0 = arith.constant 0 : i32
    %c0_i32_1 = arith.constant 0 : i32
    return %c0_i32, %c0_i32_0 : i32, i32
  }
  func.func @transform_2(%arg0: i32) -> (i32, i32) {
    %c0_i32 = arith.constant 0 : i32
    %c0_i32_0 = arith.constant 0 : i32
    %c0_i32_1 = arith.constant 0 : i32
    return %c0_i32, %c0_i32_0 : i32, i32
  }
  func.func @transform_3(%arg0: i32) -> (i32, i32) {
    %c0_i32 = arith.constant 0 : i32
    %c0_i32_0 = arith.constant 0 : i32
    %c0_i32_1 = arith.constant 0 : i32
    return %c0_i32, %c0_i32_0 : i32, i32
  }
  func.func @transform_4(%arg0: i32) -> (i32, i32) {
    %c0_i32 = arith.constant 0 : i32
    %c0_i32_0 = arith.constant 0 : i32
    %c0_i32_1 = arith.constant 0 : i32
    return %c0_i32, %c0_i32_0 : i32, i32
  }
  func.func @transform_5(%arg0: i32) -> (i32, i32) {
    %c0_i32 = arith.constant 0 : i32
    %c0_i32_0 = arith.constant 0 : i32
    %c0_i32_1 = arith.constant 0 : i32
    return %c0_i32, %c0_i32_0 : i32, i32
  }
  func.func @transform_6(%arg0: i32) -> (i32, i32) {
    %c0_i32 = arith.constant 0 : i32
    %c0_i32_0 = arith.constant 0 : i32
    %c0_i32_1 = arith.constant 0 : i32
    return %c0_i32, %c0_i32_0 : i32, i32
  }
  func.func @transform_7(%arg0: i32) -> (i32, i32) {
    %c0_i32 = arith.constant 0 : i32
    %c0_i32_0 = arith.constant 0 : i32
    %c0_i32_1 = arith.constant 0 : i32
    return %c0_i32, %c0_i32_0 : i32, i32
  }
  func.func @transform_8(%arg0: i32) -> (i32, i32) {
    %c0_i32 = arith.constant 0 : i32
    %c0_i32_0 = arith.constant 0 : i32
    %c0_i32_1 = arith.constant 0 : i32
    return %c0_i32, %c0_i32_0 : i32, i32
  }
  func.func @transform_9(%arg0: i32) -> (i32, i32) {
    %c0_i32 = arith.constant 0 : i32
    %c0_i32_0 = arith.constant 0 : i32
    return %arg0, %c0_i32 : i32, i32
  }
  func.func @transform_10(%arg0: i32) -> (i32, i32) {
    %c0_i32 = arith.constant 0 : i32
    %c0_i32_0 = arith.constant 0 : i32
    return %arg0, %c0_i32 : i32, i32
  }
}

</mosaic_0001>

<bundles_post_ra>
// kernel: tpu_custom_call.1
= control target key start
LH: loop header
LB: loop body
LE: loop exit
PB: predicated region body
PF: predicated region fallthrough
CT: control target
= control target key end

     0   :  { %16 = vsyncpa [#allocation3], 0  ;;  %s1255_s0 = inlined_call_operand.hbm [shape: bf16[16,128], index: 0, kind: input, shape index: {}]   ;;  %s1256_s1 = inlined_call_operand.hbm [shape: bf16[128,128], index: 1, kind: input, shape index: {}]   ;;  %s1257_s2 = inlined_call_operand.vmem [shape: f32[1,128], index: 2, kind: input, shape index: {}]   ;;  %s1258_s3 = inlined_call_operand.hbm [shape: bf16[128,256], index: 3, kind: input, shape index: {}]   ;;  %s1259_s4 = inlined_call_operand.vmem [shape: f32[1,256], index: 4, kind: input, shape index: {}]   ;;  %s1260_s5 = inlined_call_operand.hbm [shape: bf16[128,128], index: 5, kind: input, shape index: {}]   ;;  %s1261_s6 = inlined_call_operand.vmem [shape: f32[1,128], index: 6, kind: input, shape index: {}]   ;;  %s1262_s7 = inlined_call_operand.hbm [shape: bf16[128,128], index: 7, kind: input, shape index: {}]   ;;  %s1263_s8 = inlined_call_operand.vmem [shape: f32[1,128], index: 8, kind: input, shape index: {}]   ;;  %s1264_s9 = inlined_call_operand.hbm [shape: f32[16,256], index: 9, kind: output, shape index: {0}]   ;;  %s1265_s10 = inlined_call_operand.hbm [shape: f32[16,128], index: 10, kind: output, shape index: {1}]  }
   0x1   :  { %17 = vsyncpa [#allocation6], 0 }
   0x2   :  { %18 = vsyncpa [#allocation9], 0 }
   0x3   :  { %19 = vsyncpa [#allocation4], 0 }
   0x4   :  { %20 = vsyncpa [#allocation13], 0  ;;  %s1026_s13 = smov [#allocation5]   ;;  %s1027_s15 = smov [#allocation8]  }
   0x5   :  { %s38_s14 = sshll.u32 %s1026_s13, 4  ;;  %s66_s16 = sshll.u32 %s1027_s15, 4  ;;  %s39_s14 = int_to_ptr.vmem [resolvable:$true] %s38_s14  ;;  %s1097_s16 = int_to_ptr.vmem [resolvable:$true] %s66_s16 }
   0x6   :  { %s862_s19 = scalar_lea.hbm %s1256_s1, 1024 }
   0x7   :  { %p863_p0 = scmp.ne.s32.totalorder %s1256_s1, %s862_s19  ;;  %p866_p1 = scmp.lt.u32.totalorder %s862_s19, %s1256_s1 }
   0x9   :  { %p868_p2 = pnand %p866_p1, %p863_p0 }
   0xb   :  { %871 = shalt.err (!%p868_p2)
}
   0xc   :  { %s872_s24 = scalar_lea.vmem %s39_s14, 1024  ;;  %p877_p4 = scmp.lt.s32.totalorder %s39_s14, %s39_s14 }
   0xd   :  { %p873_p3 = scmp.ne.s32.totalorder %s39_s14, %s872_s24  ;;  %p878_p5 = scmp.lt.s32.totalorder %s872_s24, %s872_s24 }
   0xf   :  { %p879_p6 = por %p878_p5, %p877_p4 }
  0x11   :  { %p880_p7 = pnand %p879_p6, %p873_p3 }
  0x13   :  { %883 = shalt.err (!%p880_p7)
}
  0x14   :  { %s1028_s25 = smov 64   ;;  %s1029_s26 = smov 4  }
  0x15   :  { %44 = dma.hbm_to_vmem [thread:$0]  %s1256_s1, 1024, %s39_s14, [#allocation6], %s1028_s25, %s1028_s25, %s1029_s26  }
  0x16   :  { %s884_s11 = scalar_lea.hbm %s1260_s5, 1024 }
  0x17   :  { %p885_p8 = scmp.ne.s32.totalorder %s1260_s5, %s884_s11  ;;  %p888_p9 = scmp.lt.u32.totalorder %s884_s11, %s1260_s5 }
  0x19   :  { %p890_p10 = pnand %p888_p9, %p885_p8 }
  0x1b   :  { %893 = shalt.err (!%p890_p10)
}
  0x1c   :  { %s894_s18 = scalar_lea.vmem %s1097_s16, 1024  ;;  %p899_p12 = scmp.lt.s32.totalorder %s1097_s16, %s1097_s16 }
  0x1d   :  { %p895_p11 = scmp.ne.s32.totalorder %s1097_s16, %s894_s18  ;;  %p900_p13 = scmp.lt.s32.totalorder %s894_s18, %s894_s18 }
  0x1f   :  { %p901_p0 = por %p900_p13, %p899_p12 }
  0x21   :  { %p902_p1 = pnand %p901_p0, %p895_p11 }
  0x23   :  { %905 = shalt.err (!%p902_p1)
}
  0x24   :  { %72 = dma.hbm_to_vmem [thread:$0]  %s1260_s5, 1024, %s1097_s16, [#allocation9], %s1028_s25, %s1028_s25, %s1029_s26  }
  0x25   :  { %s1030_s19 = smov [#allocation2]   ;;  %s1031_s21 = smov [#allocation7]  }
  0x26   :  { %s26_s20 = sshll.u32 %s1030_s19, 4  ;;  %s52_s22 = sshll.u32 %s1031_s21, 4  ;;  %s27_s20 = int_to_ptr.vmem [resolvable:$true] %s26_s20  ;;  %s1134_s22 = int_to_ptr.vmem [resolvable:$true] %s52_s22 }
  0x27   :  { %s906_s27 = scalar_lea.hbm %s1255_s0, 128 }
  0x28   :  { %p907_p2 = scmp.ne.s32.totalorder %s1255_s0, %s906_s27  ;;  %p910_p3 = scmp.lt.u32.totalorder %s906_s27, %s1255_s0 }
  0x2a   :  { %p912_p4 = pnand %p910_p3, %p907_p2 }
  0x2c   :  { %915 = shalt.err (!%p912_p4)
}
  0x2d   :  { %s916_s5 = scalar_lea.vmem %s27_s20, 128  ;;  %p921_p6 = scmp.lt.s32.totalorder %s27_s20, %s27_s20 }
  0x2e   :  { %p917_p5 = scmp.ne.s32.totalorder %s27_s20, %s916_s5  ;;  %p922_p7 = scmp.lt.s32.totalorder %s916_s5, %s916_s5 }
  0x30   :  { %p923_p8 = por %p922_p7, %p921_p6 }
  0x32   :  { %p924_p9 = pnand %p923_p8, %p917_p5 }
  0x34   :  { %927 = shalt.err (!%p924_p9)
}
  0x35   :  { %32 = dma.hbm_to_vmem [thread:$0]  %s1255_s0, 128, %s27_s20, [#allocation3], %s1028_s25, %s1028_s25, %s1029_s26  }
  0x36   :  { %s928_s17 = scalar_lea.hbm %s1258_s3, 2048 }
  0x37   :  { %p929_p10 = scmp.ne.s32.totalorder %s1258_s3, %s928_s17  ;;  %p932_p11 = scmp.lt.u32.totalorder %s928_s17, %s1258_s3 }
  0x39   :  { %p934_p12 = pnand %p932_p11, %p929_p10 }
  0x3b   :  { %937 = shalt.err (!%p934_p12)
}
  0x3c   :  { %s938_s21 = scalar_lea.vmem %s1134_s22, 2048  ;;  %p943_p0 = scmp.lt.s32.totalorder %s1134_s22, %s1134_s22 }
  0x3d   :  { %p939_p13 = scmp.ne.s32.totalorder %s1134_s22, %s938_s21  ;;  %p944_p1 = scmp.lt.s32.totalorder %s938_s21, %s938_s21 }
  0x3f   :  { %p945_p2 = por %p944_p1, %p943_p0 }
  0x41   :  { %p946_p3 = pnand %p945_p2, %p939_p13 }
  0x43   :  { %949 = shalt.err (!%p946_p3)
}
  0x44   :  { %s1032_s0 = smov 128   ;;  %s1033_s20 = smov 8  }
  0x45   :  { %58 = dma.hbm_to_vmem [thread:$0]  %s1258_s3, 2048, %s1134_s22, [#allocation6], %s1032_s0, %s1032_s0, %s1033_s20  }
  0x46   :  { %s1034_s27 = smov [#allocation10]   ;;  %s950_s11 = scalar_lea.hbm %s1262_s7, 1024 }
  0x47   :  { %s80_s28 = sshll.u32 %s1034_s27, 4  ;;  %p951_p4 = scmp.ne.s32.totalorder %s1262_s7, %s950_s11  ;;  %s81_s28 = int_to_ptr.vmem [resolvable:$true] %s80_s28 }
  0x48   :  { %p954_p5 = scmp.lt.u32.totalorder %s950_s11, %s1262_s7 }
  0x4a   :  { %p956_p6 = pnand %p954_p5, %p951_p4 }
  0x4c   :  { %959 = shalt.err (!%p956_p6)
}
  0x4d   :  { %s960_s15 = scalar_lea.vmem %s81_s28, 1024  ;;  %p965_p8 = scmp.lt.s32.totalorder %s81_s28, %s81_s28 }
  0x4e   :  { %p961_p7 = scmp.ne.s32.totalorder %s81_s28, %s960_s15  ;;  %p966_p9 = scmp.lt.s32.totalorder %s960_s15, %s960_s15 }
  0x50   :  { %p967_p10 = por %p966_p9, %p965_p8 }
  0x52   :  { %p968_p11 = pnand %p967_p10, %p961_p7 }
  0x54   :  { %971 = shalt.err (!%p968_p11)
}
  0x55   :  { %86 = dma.hbm_to_vmem [thread:$0]  %s1262_s7, 1024, %s81_s28, [#allocation9], %s1028_s25, %s1028_s25, %s1029_s26  }
  0x56   :  { %1016 = dma.done.wait [#allocation3], 128  }
  0x57   :  { %1017 = vsyncadd [#allocation3], 4294967168 }
  0x58   :  { %1018 = dma.done.wait [#allocation6], 3072  }
  0x59   :  { %1019 = vsyncadd [#allocation6], 4294964224 }
  0x5a   :  { %1020 = dma.done.wait [#allocation9], 2048  }
  0x5b   :  { %1021 = vsyncadd [#allocation9], 4294965248  ;;  %v1035_v0 = vmov 0.0   ;;  %vm1036_vm0 = vmmov 0   ;;  %v805_v1 = vld [vmem:[#allocation5] sm:$0xff]   ;;  %v806_v2 = vld [vmem:[#allocation5 + $0x8] sm:$0xff]   ;;  %v246_v51 = vlaneseq }
  0x5c   :  { %729 = vmatprep.subr.bf16.mxu0 %v1035_v0  ;;  %745 = vmatprep.mubr.msk.bf16.mxu0 %vm1036_vm0, %v1035_v0  ;;  %v807_v3 = vld [vmem:[#allocation5 + $0x10] sm:$0xff]   ;;  %v808_v4 = vld [vmem:[#allocation5 + $0x18] sm:$0xff]   ;;  %v814_v5 = vld [vmem:[#allocation7 + $0x4] ss:$8 sps:$4 sm:$0xff]   ;;  %v1037_v26 = vmov 0   ;;  %s1038_s18 = smov [#allocation11]  }
  0x5d   :  { %730 = vmatpush3.bf16.msra.mxu0 %v805_v1  ;;  %v816_v6 = vld [vmem:[#allocation7] ss:$8 sps:$4 sm:$0xff]   ;;  %336 = vmatprep.subr.bf16.mxu1 %v814_v5  ;;  %v817_v7 = vld [vmem:[#allocation7 + $0x14] ss:$8 sps:$4 sm:$0xff]   ;;  %v819_v8 = vld [vmem:[#allocation7 + $0x10] ss:$8 sps:$4 sm:$0xff]  }
  0x5e   :  { %731 = vmatprep.subr.bf16.mxu0 %v1035_v0  ;;  %337 = vmatpush1.bf16.msra.mxu1 %v816_v6  ;;  %v820_v9 = vld [vmem:[#allocation7 + $0x24] ss:$8 sps:$4 sm:$0xff]   ;;  %v822_v12 = vld [vmem:[#allocation7 + $0x20] ss:$8 sps:$4 sm:$0xff]   ;;  %v823_v13 = vld [vmem:[#allocation7 + $0x34] ss:$8 sps:$4 sm:$0xff]  }
  0x5f   :  { %338 = vmatprep.subr.bf16.mxu1 %v817_v7  ;;  %v809_v10 = vld [vmem:[#allocation5 + $0x20] sm:$0xff]   ;;  %v810_v11 = vld [vmem:[#allocation5 + $0x28] sm:$0xff]   ;;  %v825_v14 = vld [vmem:[#allocation7 + $0x30] ss:$8 sps:$4 sm:$0xff]   ;;  %368 = vmatprep.mubr.bf16.mxu1 %v1037_v26  ;;  %v247_v52 = vshrl.u32 %v246_v51, 7  ;;  %s628_s1 = sshll.u32 %s1038_s18, 4  ;;  %s629_s1 = int_to_ptr.vmem [resolvable:$true] %s628_s1 }
  0x60   :  { %v826_v15 = vld [vmem:[#allocation7 + $0x44] ss:$8 sps:$4 sm:$0xff]   ;;  %v811_v16 = vld [vmem:[#allocation5 + $0x30] sm:$0xff]   ;;  %v828_v17 = vld [vmem:[#allocation7 + $0x40] ss:$8 sps:$4 sm:$0xff]   ;;  %s972_s14 = scalar_lea.vmem %s629_s1, 512  ;;  %p977_p13 = scmp.lt.s32.totalorder %s629_s1, %s629_s1 }
  0x61   :  { %732 = vmatpush3.bf16.msra.mxu0 %v806_v2  ;;  %v829_v18 = vld [vmem:[#allocation7 + $0x54] ss:$8 sps:$4 sm:$0xff]   ;;  %v831_v20 = vld [vmem:[#allocation7 + $0x50] ss:$8 sps:$4 sm:$0xff]   ;;  %v832_v22 = vld [vmem:[#allocation7 + $0x64] ss:$8 sps:$4 sm:$0xff]   ;;  %p973_p12 = scmp.ne.s32.totalorder %s629_s1, %s972_s14  ;;  %p978_p0 = scmp.lt.s32.totalorder %s972_s14, %s972_s14 }
  0x62   :  { %733 = vmatprep.subr.bf16.mxu0 %v1035_v0  ;;  %339 = vmatpush1.bf16.msra.mxu1 %v819_v8  ;;  %v812_v19 = vld [vmem:[#allocation5 + $0x38] sm:$0xff]   ;;  %v834_v23 = vld [vmem:[#allocation7 + $0x60] ss:$8 sps:$4 sm:$0xff]   ;;  %v840_v29 = vld [vmem:[#allocation8 + $0x10] sm:$0xff]   ;;  %v248_v53 = vsub.s32 0, %v247_v52  ;;  %v252_v55 = vsub.s32 1, %v247_v52 }
  0x63   :  { %340 = vmatprep.subr.bf16.mxu1 %v820_v9  ;;  %v813_v21 = vld [vmem:[#allocation2] sm:$0xff]   ;;  %v838_v27 = vld [vmem:[#allocation8] sm:$0xff]   ;;  %v839_v28 = vld [vmem:[#allocation8 + $0x8] sm:$0xff]   ;;  %p979_p1 = por %p978_p0, %p977_p13 }
  0x64   :  { %v835_v24 = vld [vmem:[#allocation7 + $0x74] ss:$8 sps:$4 sm:$0xff]   ;;  %v837_v25 = vld [vmem:[#allocation7 + $0x70] ss:$8 sps:$4 sm:$0xff]   ;;  %v842_v31 = vld [vmem:[#allocation8 + $0x20] sm:$0xff]  }
  0x65   :  { %734 = vmatpush3.bf16.msra.mxu0 %v807_v3  ;;  %v841_v30 = vld [vmem:[#allocation8 + $0x18] sm:$0xff]   ;;  %v843_v32 = vld [vmem:[#allocation8 + $0x28] sm:$0xff]   ;;  %v844_v43 = vld [vmem:[#allocation8 + $0x30] sm:$0xff]   ;;  %p980_p2 = pnand %p979_p1, %p973_p12 }
  0x66   :  { %735 = vmatprep.subr.bf16.mxu0 %v1035_v0  ;;  %341 = vmatpush1.bf16.msra.mxu1 %v822_v12  ;;  %v658_v33 = vld [vmem:[%s1257_s2] ss:$0 sm:$0xff]  ;;  %v846_v45 = vld [vmem:[#allocation10] sm:$0xff]   ;;  %v847_v46 = vld [vmem:[#allocation10 + $0x8] sm:$0xff]  }
  0x67   :  { %342 = vmatprep.subr.bf16.mxu1 %v823_v13  ;;  %v845_v44 = vld [vmem:[#allocation8 + $0x38] sm:$0xff]   ;;  %v848_v47 = vld [vmem:[#allocation10 + $0x10] sm:$0xff]   ;;  %v850_v49 = vld [vmem:[#allocation10 + $0x20] sm:$0xff]  }
  0x68   :  { %v849_v48 = vld [vmem:[#allocation10 + $0x18] sm:$0xff]   ;;  %v851_v50 = vld [vmem:[#allocation10 + $0x28] sm:$0xff]  }
  0x69   :  { %736 = vmatpush3.bf16.msra.mxu0 %v808_v4  ;;  %v244_v54 = vld [vmem:[%s1259_s4] sm:$0x3]  ;;  %v852_v4 = vld [vmem:[#allocation10 + $0x30] sm:$0xff]  }
  0x6a   :  { %737 = vmatprep.subr.bf16.mxu0 %v1035_v0  ;;  %343 = vmatpush1.bf16.msra.mxu1 %v825_v14  ;;  %v249_v56 = vrot.slane %v244_v54, %v248_v53  ;;  %v253_v57 = vrot.slane %v244_v54, %v252_v55  ;;  %v853_v5 = vld [vmem:[#allocation10 + $0x38] sm:$0xff]  }
  0x6b   :  { %344 = vmatprep.subr.bf16.mxu1 %v826_v15  ;;  %v684_v6 = vld [vmem:[%s1261_s6] ss:$0 sm:$0xff] }
  0x6d   :  { %738 = vmatpush3.bf16.msra.mxu0 %v809_v10 }
  0x6e   :  { %739 = vmatprep.subr.bf16.mxu0 %v1035_v0  ;;  %345 = vmatpush1.bf16.msra.mxu1 %v828_v17 }
  0x6f   :  { %346 = vmatprep.subr.bf16.mxu1 %v829_v18 }
  0x71   :  { %740 = vmatpush3.bf16.msra.mxu0 %v810_v11 }
  0x72   :  { %741 = vmatprep.subr.bf16.mxu0 %v1035_v0  ;;  %347 = vmatpush1.bf16.msra.mxu1 %v831_v20 }
  0x73   :  { %348 = vmatprep.subr.bf16.mxu1 %v832_v22 }
  0x75   :  { %742 = vmatpush3.bf16.msra.mxu0 %v811_v16 }
  0x76   :  { %743 = vmatprep.subr.bf16.mxu0 %v1035_v0  ;;  %349 = vmatpush1.bf16.msra.mxu1 %v834_v23 }
  0x77   :  { %350 = vmatprep.subr.bf16.mxu1 %v835_v24 }
  0x79   :  { %744 = vmatpush3.bf16.msra.mxu0 %v812_v19 }
  0x7a   :  { %749 = vmatprep.subr.bf16.mxu0 %v1035_v0  ;;  %351 = vmatpush1.bf16.msra.mxu1 %v837_v25 }
  0x7b   :  { %769 = vmatprep.subr.bf16.mxu1 %v1035_v0 }
  0x7c   :  { %746 = vmatmul.mubr.bf16.vlgmr.msra.gmra.mrb[0].mxu0 %v813_v21 }
  0x7d   :  { %765 = vmatprep.mubr.msk.bf16.mxu0 %vm1036_vm0, %v1035_v0  ;;  %750 = vmatpush3.bf16.msra.mxu0 %v838_v27 }
  0x7e   :  { %751 = vmatprep.subr.bf16.mxu0 %v1035_v0 }
  0x81   :  { %752 = vmatpush3.bf16.msra.mxu0 %v839_v28 }
  0x82   :  { %753 = vmatprep.subr.bf16.mxu0 %v1035_v0 }
  0x85   :  { %754 = vmatpush3.bf16.msra.mxu0 %v840_v29 }
  0x86   :  { %755 = vmatprep.subr.bf16.mxu0 %v1035_v0 }
  0x89   :  { %756 = vmatpush3.bf16.msra.mxu0 %v841_v30 }
  0x8a   :  { %757 = vmatprep.subr.bf16.mxu0 %v1035_v0 }
  0x8d   :  { %758 = vmatpush3.bf16.msra.mxu0 %v842_v31 }
  0x8e   :  { %759 = vmatprep.subr.bf16.mxu0 %v1035_v0 }
  0x91   :  { %760 = vmatpush3.bf16.msra.mxu0 %v843_v32 }
  0x92   :  { %761 = vmatprep.subr.bf16.mxu0 %v1035_v0 }
  0x95   :  { %762 = vmatpush3.bf16.msra.mxu0 %v844_v43 }
  0x96   :  { %763 = vmatprep.subr.bf16.mxu0 %v1035_v0 }
  0x99   :  { %764 = vmatpush3.bf16.msra.mxu0 %v845_v44 }
 0x14f   :  { %v218_v34 = vpop.f32.mrb[0].mxu0 }
 0x150   :  { %v219_v35 = vadd.f32 %v658_v33, %v218_v34  ;;  %v747_v36 = vpop.f32.mrb[1].mxu0 }
 0x151   :  { %v221_v37 = vpop.f32.mrb[2].mxu0 }
 0x152   :  { %v222_v38 = vadd.f32 %v658_v33, %v221_v37  ;;  %v748_v39 = vpop.f32.mrb[3].mxu0  ;;  %v225_v40 = vmax.f32 %v219_v35, 0.0 }
 0x154   :  { %v226_v41 = vmax.f32 %v222_v38, 0.0 }
 0x156   :  { %v227_v42 = vpack.c.bf16 %v226_v41, %v225_v40 }
 0x158   :  { %369 = vmatmul.mubr.bf16.vlgmr.msra.gmra.mrb[0].mxu1 %v227_v42 }
 0x159   :  { %785 = vmatprep.mubr.msk.bf16.mxu1 %vm1036_vm0, %v1035_v0  ;;  %770 = vmatpush3.bf16.msra.mxu1 %v846_v45 }
 0x15a   :  { %771 = vmatprep.subr.bf16.mxu1 %v1035_v0 }
 0x15d   :  { %772 = vmatpush3.bf16.msra.mxu1 %v847_v46 }
 0x15e   :  { %773 = vmatprep.subr.bf16.mxu1 %v1035_v0 }
 0x161   :  { %774 = vmatpush3.bf16.msra.mxu1 %v848_v47 }
 0x162   :  { %775 = vmatprep.subr.bf16.mxu1 %v1035_v0 }
 0x165   :  { %776 = vmatpush3.bf16.msra.mxu1 %v849_v48 }
 0x166   :  { %777 = vmatprep.subr.bf16.mxu1 %v1035_v0 }
 0x169   :  { %778 = vmatpush3.bf16.msra.mxu1 %v850_v49 }
 0x16a   :  { %779 = vmatprep.subr.bf16.mxu1 %v1035_v0 }
 0x16d   :  { %780 = vmatpush3.bf16.msra.mxu1 %v851_v50 }
 0x16e   :  { %781 = vmatprep.subr.bf16.mxu1 %v1035_v0 }
 0x171   :  { %782 = vmatpush3.bf16.msra.mxu1 %v852_v4 }
 0x172   :  { %783 = vmatprep.subr.bf16.mxu1 %v1035_v0 }
 0x175   :  { %784 = vmatpush3.bf16.msra.mxu1 %v853_v5 }
 0x22b   :  { %v370_v58 = vpop.f32.mrb[0].mxu1 }
 0x22c   :  { %v371_v59 = vadd.f32 %v370_v58, %v249_v56  ;;  %v372_v60 = vpop.f32.mrb[1].mxu1 }
 0x22d   :  { %v373_v61 = vadd.f32 %v372_v60, %v253_v57  ;;  %v374_v62 = vpop.f32.mrb[2].mxu1 }
 0x22e   :  { %379 = vst [vmem:[#allocation11] sm:$0xff] %v371_v59  ;;  %v375_v63 = vadd.f32 %v374_v62, %v249_v56  ;;  %v376_v1 = vpop.f32.mrb[3].mxu1 }
 0x22f   :  { %380 = vst [vmem:[#allocation11 + $0x8] sm:$0xff] %v373_v61  ;;  %v377_v2 = vadd.f32 %v376_v1, %v253_v57 }
 0x230   :  { %381 = vst [vmem:[#allocation11 + $0x10] sm:$0xff] %v375_v63  ;;  %v383_v3 = vpack.c.bf16 %v375_v63, %v371_v59 }
 0x231   :  { %382 = vst [vmem:[#allocation11 + $0x18] sm:$0xff] %v377_v2 }
 0x232   :  { %766 = vmatmul.mubr.bf16.vlgmr.msra.gmra.mrb[4].mxu0 %v383_v3 }
 0x305   :  { %v489_v7 = vpop.f32.mrb[4].mxu0 }
 0x306   :  { %v490_v8 = vadd.f32 %v684_v6, %v489_v7  ;;  %v767_v9 = vpop.f32.mrb[5].mxu0 }
 0x307   :  { %v492_v10 = vpop.f32.mrb[6].mxu0 }
 0x308   :  { %v493_v11 = vadd.f32 %v684_v6, %v492_v10  ;;  %v768_v12 = vpop.f32.mrb[7].mxu0  ;;  %v496_v13 = vmax.f32 %v490_v8, 0.0 }
 0x30a   :  { %v497_v14 = vmax.f32 %v493_v11, 0.0 }
 0x30c   :  { %v498_v15 = vpack.c.bf16 %v497_v14, %v496_v13 }
 0x30e   :  { %786 = vmatmul.mubr.bf16.vlgmr.msra.gmra.mrb[4].mxu1 %v498_v15 }
 0x30f   :  { %983 = shalt.err (!%p980_p2)
}
 0x310   :  { %s984_s21 = scalar_lea.hbm %s1264_s9, 512 }
 0x311   :  { %p985_p3 = scmp.ne.s32.totalorder %s1264_s9, %s984_s21  ;;  %p988_p4 = scmp.lt.u32.totalorder %s984_s21, %s1264_s9 }
 0x313   :  { %p990_p5 = pnand %p988_p4, %p985_p3 }
 0x315   :  { %993 = shalt.err (!%p990_p5)
}
 0x316   :  { %s1039_s29 = smov 256   ;;  %s1040_s30 = smov 16   ;;  %v693_v0 = vld [vmem:[%s1263_s8] ss:$0 sm:$0xff] }
 0x317   :  { %634 = dma.vmem_to_hbm [thread:$0]  %s629_s1, 512, %s1264_s9, [#allocation4], %s1039_s29, %s1039_s29, %s1040_s30  }
 0x318   :  { %s1041_s9 = smov [#allocation12]  }
 0x319   :  { %s640_s8 = sshll.u32 %s1041_s9, 4  ;;  %s641_s8 = int_to_ptr.vmem [resolvable:$true] %s640_s8 }
 0x31a   :  { %s994_s13 = scalar_lea.vmem %s641_s8, 256  ;;  %p999_p7 = scmp.lt.s32.totalorder %s641_s8, %s641_s8 }
 0x31b   :  { %p995_p6 = scmp.ne.s32.totalorder %s641_s8, %s994_s13  ;;  %p1000_p8 = scmp.lt.s32.totalorder %s994_s13, %s994_s13 }
 0x31d   :  { %p1001_p9 = por %p1000_p8, %p999_p7 }
 0x31f   :  { %p1002_p10 = pnand %p1001_p9, %p995_p6 }
 0x3e1   :  { %v604_v16 = vpop.f32.mrb[4].mxu1 }
 0x3e2   :  { %v605_v17 = vadd.f32 %v693_v0, %v604_v16  ;;  %v787_v18 = vpop.f32.mrb[5].mxu1 }
 0x3e3   :  { %v607_v19 = vpop.f32.mrb[6].mxu1 }
 0x3e4   :  { %v611_v20 = vsub.f32 0.0, %v605_v17  ;;  %v608_v21 = vadd.f32 %v693_v0, %v607_v19  ;;  %v788_v22 = vpop.f32.mrb[7].mxu1 }
 0x3e6   :  { %v613_v23 = vmul.f32 1.442695, %v611_v20  ;;  %v612_v24 = vsub.f32 0.0, %v608_v21 }
 0x3e8   :  { %854 = vpow2.f32 %v613_v23  ;;  %v615_v25 = vmul.f32 1.442695, %v612_v24 }
 0x3ea   :  { %856 = vpow2.f32 %v615_v25 }
 0x3f2   :  { %v855_v26 = vpop.eup %854 }
 0x3f3   :  { %v617_v27 = vadd.f32 1.0, %v855_v26 }
 0x3f4   :  { %v857_v28 = vpop.eup %856 }
 0x3f5   :  { %858 = vrcp.f32 %v617_v27  ;;  %v618_v29 = vadd.f32 1.0, %v857_v28 }
 0x3f7   :  { %860 = vrcp.f32 %v618_v29 }
 0x3ff   :  { %v859_v30 = vpop.eup %858 }
 0x400   :  { %621 = vst [vmem:[#allocation12] sm:$0xff] %v859_v30 }
 0x401   :  { %v861_v31 = vpop.eup %860 }
 0x402   :  { %622 = vst [vmem:[#allocation12 + $0x8] sm:$0xff] %v861_v31 }
 0x403   :  { %1005 = shalt.err (!%p1002_p10)
}
 0x404   :  { %s1006_s22 = scalar_lea.hbm %s1265_s10, 256 }
 0x405   :  { %p1007_p11 = scmp.ne.s32.totalorder %s1265_s10, %s1006_s22  ;;  %p1010_p12 = scmp.lt.u32.totalorder %s1006_s22, %s1265_s10 }
 0x407   :  { %p1012_p13 = pnand %p1010_p12, %p1007_p11 }
 0x409   :  { %1015 = shalt.err (!%p1012_p13)
}
 0x40a   :  { %646 = dma.vmem_to_hbm [thread:$0]  %s641_s8, 256, %s1265_s10, [#allocation13], %s1032_s0, %s1032_s0, %s1033_s20  }
 0x40b   :  { %1022 = dma.done.wait [#allocation4], 512  }
 0x40c   :  { %1023 = vsyncadd [#allocation4], 4294966784 }
 0x40d   :  { %1024 = dma.done.wait [#allocation13], 256  }
 0x40e   :  { %1025 = vsyncadd [#allocation13], 4294967040 }
 0x40f   :  { %653 = vsyncpa [#allocation3], 1 }
 0x410   :  { %654 = vsyncpa [#allocation6], 1 }
 0x411   :  { %655 = vsyncpa [#allocation9], 1 }
 0x412   :  { %656 = vsyncpa [#allocation4], 1 }
 0x413   :  { %657 = vsyncpa [#allocation13], 1 }

</bundles_post_ra>
